<compile_context>
chip_gen: v7x
topology: tpu7x:2x2x1
jax: 0.10.0
libtpu: 0.0.40
codegen_flags: <defaults>
</compile_context>

<pallas_src>
import functools
import math

import jax
import jax.numpy as jnp
from jax.experimental import pallas as pl
from jax.experimental.pallas import tpu as pltpu

# ----------------------------- config ("flags_obj") -------------------------
NUM_USERS = 24
NUM_ITEMS = 40
NUM_NODES = NUM_USERS + NUM_ITEMS   # 64
EMBED_DIM = 32          # embedding_dim
Q = 16                  # flags_obj.q  (low-rank SVD rank)
N_LAYERS = 2            # flags_obj.n_layers
PRE_WEIGHT = 0.1        # flags_obj.pre_weight
STR_WEIGHT = 0.1        # flags_obj.str_weight
BATCH = 16              # number of (user, item) training samples
POOL = 4                # items_pool width


# ----------------------------- fused Pallas kernel ---------------------------
def mia_fused_kernel(lhs_ref, rhs_ref, meta_ref, out_ref, *,
                     n_nodes, batch, embed_dim, pre_weight, str_weight):
    """Fused MIA forward.

    lhs_ref  : (U+I, 2(U+I)=128)  [prop_mat | blockdiag(user_factors, item_factors)]
    rhs_ref  : (128, 4D=128)      [[pref0, 0, 0], [0, maps_blk, 0]]
    meta_ref : (4B, 128)          lanes [0:U+I] one-hot gather matrix for
                                  [users; adj; weak; strong]; lanes [U+I:U+I+2]
                                  of rows [0:B] = [weak_weight | strong_weight]
    out_ref  : (8, 128)           loss broadcast into a full tile
    """
    d = embed_dim
    b = batch

    # ---- MXU dot #1: propagation + structure/exposure projections ----------
    # node_feat lanes: [0:D] preference (M @ pref0), [D:2D] structure,
    #                  [2D:3D] exposure, [3D:4D] zero padding.
    node_feat = jnp.dot(lhs_ref[...], rhs_ref[...],
                        preferred_element_type=jnp.float32)        # (U+I, 128)

    # ---- MXU dot #2: one-hot gather for users/adjacent/weak/strong ---------
    meta = meta_ref[...]
    onehot = meta[:, :n_nodes]                                      # (4B, U+I)
    g = jnp.dot(onehot, node_feat,
                preferred_element_type=jnp.float32)                 # (4B, 128)

    # rows: [0:B] users, [B:2B] adjacent, [2B:3B] weak, [3B:4B] strong
    u = g[0:b, :]
    others = g[b:, :]                                               # (3B, 128)
    prods = jnp.concatenate([u, u, u], axis=0) * others             # (3B, 128)

    # ---- 3 segmented cross-lane reduces: pref / structure / exposure dots --
    dp = jnp.sum(prods[:, 0:d], axis=-1, keepdims=True)             # (3B, 1)
    ds = jnp.sum(prods[:, d:2 * d], axis=-1, keepdims=True)
    de = jnp.sum(prods[:, 2 * d:3 * d], axis=-1, keepdims=True)

    adj_p, weak_p, strong_p = dp[0:b], dp[b:2 * b], dp[2 * b:3 * b]
    adj_s, weak_s, strong_s = ds[0:b], ds[b:2 * b], ds[2 * b:3 * b]
    adj_e, weak_e, strong_e = de[0:b], de[b:2 * b], de[2 * b:3 * b]

    def softplus(x):
        return jnp.maximum(x, 0.0) + jnp.log1p(jnp.exp(-jnp.abs(x)))

    def sigmoid(x):
        # exact sigmoid: the weak/strong re-selection compares these ratings,
        # so an approximate reciprocal could flip near-tie selections.
        return 1.0 / (1.0 + jnp.exp(-x))

    # ---- weak/strong re-weighting and item re-selection --------------------
    # Selecting a whole embedding row then dotting == selecting the scalar dot,
    # so the re-selection operates on the already-reduced scores.
    ww = meta[0:b, n_nodes:n_nodes + 1] + sigmoid(weak_s)           # (B, 1)
    sw = meta[0:b, n_nodes + 1:n_nodes + 2] + sigmoid(strong_s)
    use_weak = sw < ww

    sel_p = jnp.where(use_weak, weak_p, strong_p)
    sel_e = jnp.where(use_weak, weak_e, strong_e)

    # users_embed = cat(exposure, preference) -> dot splits into two dots
    adj_score = adj_e + adj_p
    strong_score = sel_e + sel_p

    # ---- losses folded into one per-sample term + one mean ------------------
    per_sample = (softplus(strong_score - adj_score)                       # bpr
                  + pre_weight * softplus(-adj_p)                          # preference
                  + str_weight * 0.5 * (softplus(strong_s - adj_s)
                                        + softplus(weak_s - strong_s)))    # structure
    loss = jnp.sum(per_sample) * (1.0 / b)

    # full-tile (unmasked) store; wrapper reads [0, 0]
    out_ref[...] = jnp.full(out_ref.shape, loss, dtype=out_ref.dtype)


def mia_fused_call(lhs, rhs, meta):
    vmem = pl.BlockSpec(memory_space=pltpu.MemorySpace.VMEM)
    out = pl.pallas_call(
        functools.partial(
            mia_fused_kernel,
            n_nodes=NUM_NODES, batch=BATCH, embed_dim=EMBED_DIM,
            pre_weight=PRE_WEIGHT, str_weight=STR_WEIGHT),
        in_specs=[vmem, vmem, vmem],
        out_specs=vmem,
        out_shape=jax.ShapeDtypeStruct((8, 128), jnp.float32),
    )(lhs, rhs, meta)
    return out[0, 0]


# ----------------------------- plain-JAX glue --------------------------------
def make_symmetric_graph(train_record):
    """D^-1/2 A D^-1/2 for the bipartite adjacency [[0,R],[R^T,0]]."""
    nu, ni = train_record.shape
    top = jnp.concatenate([jnp.zeros((nu, nu)), train_record], axis=1)
    bot = jnp.concatenate([train_record.T, jnp.zeros((ni, ni))], axis=1)
    adj = jnp.concatenate([top, bot], axis=0)
    deg = adj.sum(axis=1)
    d_inv_sqrt = jnp.where(deg > 0, 1.0 / jnp.sqrt(deg), 0.0)
    return (d_inv_sqrt[:, None] * adj * d_inv_sqrt[None, :]).astype(jnp.float32)


def make_prop_matrix(graph, n_layers):
    """M = (I + G + G^2 + ... + G^n) / (n+1); static per dataset."""
    n = graph.shape[0]
    cur = jnp.eye(n, dtype=jnp.float32)
    acc = cur
    for _ in range(n_layers):
        cur = jnp.dot(graph, cur)
        acc = acc + cur
    return acc * (1.0 / float(n_layers + 1))


def lowrank_u_v_mul_s(mat, q):
    # TODO(synk): torch.svd_lowrank is a randomized SVD; exact dense top-q SVD
    # is used here.  This per-step SVD is the wall-clock dominator and should
    # be replaced by an incremental rank<=BATCH downdate of the precomputed SVD
    # (the drop graph differs from train_record in only BATCH entries).
    u, s, vt = jnp.linalg.svd(mat.astype(jnp.float32), full_matrices=False)
    u_mul_s = u[:, :q] * s[None, :q]
    v_mul_s = vt[:q, :].T * s[None, :q]
    return u_mul_s, v_mul_s


def block_diag2(a, b):
    ra, ca = a.shape
    rb, cb = b.shape
    top = jnp.concatenate([a, jnp.zeros((ra, cb), a.dtype)], axis=1)
    bot = jnp.concatenate([jnp.zeros((rb, ca), b.dtype), b], axis=1)
    return jnp.concatenate([top, bot], axis=0)


def mia_forward(params, data, users, adjacent_items, items_pool, items_weight):
    user_pref, item_pref = params["user_preference"], params["item_preference"]
    user_map, item_map = params["user_map"], params["item_map"]
    train_record = data["train_record"]

    weak_items = items_pool[:, 0]
    strong_items = items_pool[:, -1]
    weak_weight = items_weight[:, 0]
    strong_weight = items_weight[:, -1]

    # ---- Structure.computer glue: drop-graph + SVD (plain JAX) ------------
    sample = jnp.zeros((NUM_USERS, NUM_ITEMS),
                       jnp.float32).at[users, adjacent_items].set(1.0)
    drop_graph = train_record - sample
    du_mul_s, dv_mul_s = lowrank_u_v_mul_s(drop_graph, Q)

    # ---- lane-dense packing for the fused kernel ---------------------------
    # lhs = [prop_mat | blockdiag(user_factors, item_factors)]      (U+I, 128)
    user_factors = jnp.concatenate([data["u_mul_s"], du_mul_s], axis=1)  # (U, 2Q)
    item_factors = jnp.concatenate([data["v_mul_s"], dv_mul_s], axis=1)  # (I, 2Q)
    factors_blk = block_diag2(user_factors, item_factors)                # (U+I, 4Q)
    lhs = jnp.concatenate([data["prop_mat"], factors_blk], axis=1)       # (U+I, 128)

    # rhs = [[pref0, 0, 0], [0, maps_blk, 0]]                        (128, 128)
    pref0 = jnp.concatenate([user_pref, item_pref], axis=0)              # (U+I, D)
    umap_blk = block_diag2(user_map, user_map)                           # (2Q, 2D)
    imap_blk = block_diag2(item_map, item_map)                           # (2Q, 2D)
    maps_blk = jnp.concatenate([umap_blk, imap_blk], axis=0)             # (4Q, 2D)
    rhs = jnp.zeros((2 * NUM_NODES, 4 * EMBED_DIM), jnp.float32)
    rhs = rhs.at[:NUM_NODES, :EMBED_DIM].set(pref0)
    rhs = rhs.at[NUM_NODES:, EMBED_DIM:3 * EMBED_DIM].set(maps_blk)

    # meta = [one-hot | weak_weight, strong_weight | 0]               (4B, 128)
    # (indices are assumed valid in [0,U)/[0,I); an OOB index would gather a
    #  zero row instead of raising, so validate upstream if untrusted.)
    g_idx = jnp.concatenate([
        users,
        NUM_USERS + adjacent_items,
        NUM_USERS + weak_items,
        NUM_USERS + strong_items]).astype(jnp.int32)                     # (4B,)
    onehot = jax.nn.one_hot(g_idx, NUM_NODES, dtype=jnp.float32)         # (4B, U+I)
    meta = jnp.zeros((4 * BATCH, 128), jnp.float32)
    meta = meta.at[:, :NUM_NODES].set(onehot)
    meta = meta.at[:BATCH, NUM_NODES].set(weak_weight.astype(jnp.float32))
    meta = meta.at[:BATCH, NUM_NODES + 1].set(strong_weight.astype(jnp.float32))

    return mia_fused_call(lhs, rhs, meta)


# ----------------------------- main ------------------------------------------
if __name__ == "__main__":
    key = jax.random.PRNGKey(0)
    keys = jax.random.split(key, 10)

    stdv = 1.0 / math.sqrt(EMBED_DIM)
    params = {
        "user_preference": jax.random.uniform(
            keys[0], (NUM_USERS, EMBED_DIM), jnp.float32, -stdv, stdv),
        "item_preference": jax.random.uniform(
            keys[1], (NUM_ITEMS, EMBED_DIM), jnp.float32, -stdv, stdv),
        "user_map": jax.random.uniform(
            keys[2], (Q, EMBED_DIM), jnp.float32, -stdv, stdv),
        "item_map": jax.random.uniform(
            keys[3], (Q, EMBED_DIM), jnp.float32, -stdv, stdv),
    }

    # synthetic dataset: binary user-item interaction record
    train_record = (jax.random.uniform(keys[4], (NUM_USERS, NUM_ITEMS))
                    < 0.2).astype(jnp.float32)
    graph = make_symmetric_graph(train_record)
    prop_mat = make_prop_matrix(graph, N_LAYERS)          # static per dataset
    u_mul_s, v_mul_s = lowrank_u_v_mul_s(train_record, Q)
    data = {"prop_mat": prop_mat, "train_record": train_record,
            "u_mul_s": u_mul_s, "v_mul_s": v_mul_s}

    users = jax.random.randint(keys[5], (BATCH,), 0, NUM_USERS, jnp.int32)
    adjacent_items = jax.random.randint(keys[6], (BATCH,), 0, NUM_ITEMS,
                                        jnp.int32)
    items_pool = jax.random.randint(keys[7], (BATCH, POOL), 0, NUM_ITEMS,
                                    jnp.int32)
    items_weight = jax.random.uniform(keys[8], (BATCH, POOL), jnp.float32)

    loss = mia_forward(params, data, users, adjacent_items,
                       items_pool, items_weight)
    loss = jax.block_until_ready(loss)
    assert jnp.isfinite(loss), f"non-finite loss: {loss}"
    print("KERNEL_OK")
</pallas_src>

<mosaic_0001>
module attributes {stable_mosaic.version = 11 : i64} {
  func.func @mia_fused_kernel(%arg0: memref<64x128xf32, #tpu.memory_space<vmem>>, %arg1: memref<128x128xf32, #tpu.memory_space<vmem>>, %arg2: memref<64x128xf32, #tpu.memory_space<vmem>>, %arg3: memref<8x128xf32, #tpu.memory_space<vmem>>) attributes {dimension_semantics = [], scalar_prefetch = 0 : i64, scratch_operands = 0 : i64, tpu.core_type = #tpu.core_type<tc>} {
    %c0 = arith.constant 0 : index
    %c0_0 = arith.constant 0 : index
    %0 = vector.load %arg0[%c0, %c0_0] : memref<64x128xf32, #tpu.memory_space<vmem>>, vector<64x128xf32>
    %c0_1 = arith.constant 0 : index
    %c0_2 = arith.constant 0 : index
    %1 = vector.load %arg1[%c0_1, %c0_2] : memref<128x128xf32, #tpu.memory_space<vmem>>, vector<128x128xf32>
    %cst = arith.constant dense<0.000000e+00> : vector<64x128xf32>
    %2 = tpu.matmul %0, %1, %cst {dimension_numbers = #tpu.dot_dimension_numbers<[1], [0], [0], [1], [0, 0, 1, 1], [], []>} : vector<64x128xf32>, vector<128x128xf32>, vector<64x128xf32> -> vector<64x128xf32>
    %c0_3 = arith.constant 0 : index
    %c0_4 = arith.constant 0 : index
    %3 = vector.load %arg2[%c0_3, %c0_4] : memref<64x128xf32, #tpu.memory_space<vmem>>, vector<64x128xf32>
    %4 = vector.extract_strided_slice %3 {offsets = [0, 0], sizes = [64, 64], strides = [1, 1]} : vector<64x128xf32> to vector<64x64xf32>
    %cst_5 = arith.constant dense<0.000000e+00> : vector<64x128xf32>
    %5 = tpu.matmul %4, %2, %cst_5 {dimension_numbers = #tpu.dot_dimension_numbers<[1], [0], [0], [1], [0, 0, 1, 1], [], []>} : vector<64x64xf32>, vector<64x128xf32>, vector<64x128xf32> -> vector<64x128xf32>
    %6 = vector.extract_strided_slice %5 {offsets = [0, 0], sizes = [16, 128], strides = [1, 1]} : vector<64x128xf32> to vector<16x128xf32>
    %7 = vector.extract_strided_slice %5 {offsets = [16, 0], sizes = [48, 128], strides = [1, 1]} : vector<64x128xf32> to vector<48x128xf32>
    %8 = tpu.concatenate %6, %6, %6 in 0 : vector<16x128xf32>, vector<16x128xf32>, vector<16x128xf32> -> vector<48x128xf32>
    %9 = arith.mulf %8, %7 : vector<48x128xf32>
    %10 = vector.extract_strided_slice %9 {offsets = [0, 0], sizes = [48, 32], strides = [1, 1]} : vector<48x128xf32> to vector<48x32xf32>
    %cst_6 = arith.constant dense<0.000000e+00> : vector<48xf32>
    %11 = vector.multi_reduction <add>, %10, %cst_6 [1] : vector<48x32xf32> to vector<48xf32>
    %12 = vector.shape_cast %11 : vector<48xf32> to vector<48x1xf32>
    %13 = vector.extract_strided_slice %9 {offsets = [0, 32], sizes = [48, 32], strides = [1, 1]} : vector<48x128xf32> to vector<48x32xf32>
    %cst_7 = arith.constant dense<0.000000e+00> : vector<48xf32>
    %14 = vector.multi_reduction <add>, %13, %cst_7 [1] : vector<48x32xf32> to vector<48xf32>
    %15 = vector.shape_cast %14 : vector<48xf32> to vector<48x1xf32>
    %16 = vector.extract_strided_slice %9 {offsets = [0, 64], sizes = [48, 32], strides = [1, 1]} : vector<48x128xf32> to vector<48x32xf32>
    %cst_8 = arith.constant dense<0.000000e+00> : vector<48xf32>
    %17 = vector.multi_reduction <add>, %16, %cst_8 [1] : vector<48x32xf32> to vector<48xf32>
    %18 = vector.shape_cast %17 : vector<48xf32> to vector<48x1xf32>
    %19 = vector.extract_strided_slice %12 {offsets = [0, 0], sizes = [16, 1], strides = [1, 1]} : vector<48x1xf32> to vector<16x1xf32>
    %20 = vector.extract_strided_slice %12 {offsets = [16, 0], sizes = [16, 1], strides = [1, 1]} : vector<48x1xf32> to vector<16x1xf32>
    %21 = vector.extract_strided_slice %12 {offsets = [32, 0], sizes = [16, 1], strides = [1, 1]} : vector<48x1xf32> to vector<16x1xf32>
    %22 = vector.extract_strided_slice %15 {offsets = [0, 0], sizes = [16, 1], strides = [1, 1]} : vector<48x1xf32> to vector<16x1xf32>
    %23 = vector.extract_strided_slice %15 {offsets = [16, 0], sizes = [16, 1], strides = [1, 1]} : vector<48x1xf32> to vector<16x1xf32>
    %24 = vector.extract_strided_slice %15 {offsets = [32, 0], sizes = [16, 1], strides = [1, 1]} : vector<48x1xf32> to vector<16x1xf32>
    %25 = vector.extract_strided_slice %18 {offsets = [0, 0], sizes = [16, 1], strides = [1, 1]} : vector<48x1xf32> to vector<16x1xf32>
    %26 = vector.extract_strided_slice %18 {offsets = [16, 0], sizes = [16, 1], strides = [1, 1]} : vector<48x1xf32> to vector<16x1xf32>
    %27 = vector.extract_strided_slice %18 {offsets = [32, 0], sizes = [16, 1], strides = [1, 1]} : vector<48x1xf32> to vector<16x1xf32>
    %28 = vector.extract_strided_slice %3 {offsets = [0, 64], sizes = [16, 1], strides = [1, 1]} : vector<64x128xf32> to vector<16x1xf32>
    %cst_9 = arith.constant 0.000000e+00 : f32
    %29 = vector.broadcast %cst_9 : f32 to vector<16x1xf32>
    %30 = arith.subf %29, %23 : vector<16x1xf32>
    %31 = math.exp %30 : vector<16x1xf32>
    %cst_10 = arith.constant 1.000000e+00 : f32
    %32 = vector.broadcast %cst_10 : f32 to vector<16x1xf32>
    %33 = arith.addf %32, %31 : vector<16x1xf32>
    %cst_11 = arith.constant 1.000000e+00 : f32
    %34 = vector.broadcast %cst_11 : f32 to vector<16x1xf32>
    %35 = arith.divf %34, %33 : vector<16x1xf32>
    %36 = arith.addf %28, %35 : vector<16x1xf32>
    %37 = vector.extract_strided_slice %3 {offsets = [0, 65], sizes = [16, 1], strides = [1, 1]} : vector<64x128xf32> to vector<16x1xf32>
    %cst_12 = arith.constant 0.000000e+00 : f32
    %38 = vector.broadcast %cst_12 : f32 to vector<16x1xf32>
    %39 = arith.subf %38, %24 : vector<16x1xf32>
    %40 = math.exp %39 : vector<16x1xf32>
    %cst_13 = arith.constant 1.000000e+00 : f32
    %41 = vector.broadcast %cst_13 : f32 to vector<16x1xf32>
    %42 = arith.addf %41, %40 : vector<16x1xf32>
    %cst_14 = arith.constant 1.000000e+00 : f32
    %43 = vector.broadcast %cst_14 : f32 to vector<16x1xf32>
    %44 = arith.divf %43, %42 : vector<16x1xf32>
    %45 = arith.addf %37, %44 : vector<16x1xf32>
    %46 = arith.cmpf olt, %45, %36 : vector<16x1xf32>
    %47 = arith.select %46, %20, %21 : vector<16x1xi1>, vector<16x1xf32>
    %48 = arith.select %46, %26, %27 : vector<16x1xi1>, vector<16x1xf32>
    %49 = arith.addf %25, %19 : vector<16x1xf32>
    %50 = arith.addf %48, %47 : vector<16x1xf32>
    %51 = arith.subf %50, %49 : vector<16x1xf32>
    %cst_15 = arith.constant 0.000000e+00 : f32
    %52 = vector.broadcast %cst_15 : f32 to vector<16x1xf32>
    %53 = arith.maximumf %51, %52 : vector<16x1xf32>
    %54 = math.absf %51 : vector<16x1xf32>
    %cst_16 = arith.constant 0.000000e+00 : f32
    %55 = vector.broadcast %cst_16 : f32 to vector<16x1xf32>
    %56 = arith.subf %55, %54 : vector<16x1xf32>
    %57 = math.exp %56 : vector<16x1xf32>
    %58 = math.log1p %57 : vector<16x1xf32>
    %59 = arith.addf %53, %58 : vector<16x1xf32>
    %cst_17 = arith.constant 0.000000e+00 : f32
    %60 = vector.broadcast %cst_17 : f32 to vector<16x1xf32>
    %61 = arith.subf %60, %19 : vector<16x1xf32>
    %cst_18 = arith.constant 0.000000e+00 : f32
    %62 = vector.broadcast %cst_18 : f32 to vector<16x1xf32>
    %63 = arith.maximumf %61, %62 : vector<16x1xf32>
    %64 = math.absf %61 : vector<16x1xf32>
    %cst_19 = arith.constant 0.000000e+00 : f32
    %65 = vector.broadcast %cst_19 : f32 to vector<16x1xf32>
    %66 = arith.subf %65, %64 : vector<16x1xf32>
    %67 = math.exp %66 : vector<16x1xf32>
    %68 = math.log1p %67 : vector<16x1xf32>
    %69 = arith.addf %63, %68 : vector<16x1xf32>
    %cst_20 = arith.constant 1.000000e-01 : f32
    %70 = vector.broadcast %cst_20 : f32 to vector<16x1xf32>
    %71 = arith.mulf %70, %69 : vector<16x1xf32>
    %72 = arith.addf %59, %71 : vector<16x1xf32>
    %73 = arith.subf %24, %22 : vector<16x1xf32>
    %cst_21 = arith.constant 0.000000e+00 : f32
    %74 = vector.broadcast %cst_21 : f32 to vector<16x1xf32>
    %75 = arith.maximumf %73, %74 : vector<16x1xf32>
    %76 = math.absf %73 : vector<16x1xf32>
    %cst_22 = arith.constant 0.000000e+00 : f32
    %77 = vector.broadcast %cst_22 : f32 to vector<16x1xf32>
    %78 = arith.subf %77, %76 : vector<16x1xf32>
    %79 = math.exp %78 : vector<16x1xf32>
    %80 = math.log1p %79 : vector<16x1xf32>
    %81 = arith.addf %75, %80 : vector<16x1xf32>
    %82 = arith.subf %23, %24 : vector<16x1xf32>
    %cst_23 = arith.constant 0.000000e+00 : f32
    %83 = vector.broadcast %cst_23 : f32 to vector<16x1xf32>
    %84 = arith.maximumf %82, %83 : vector<16x1xf32>
    %85 = math.absf %82 : vector<16x1xf32>
    %cst_24 = arith.constant 0.000000e+00 : f32
    %86 = vector.broadcast %cst_24 : f32 to vector<16x1xf32>
    %87 = arith.subf %86, %85 : vector<16x1xf32>
    %88 = math.exp %87 : vector<16x1xf32>
    %89 = math.log1p %88 : vector<16x1xf32>
    %90 = arith.addf %84, %89 : vector<16x1xf32>
    %91 = arith.addf %81, %90 : vector<16x1xf32>
    %cst_25 = arith.constant 5.000000e-02 : f32
    %92 = vector.broadcast %cst_25 : f32 to vector<16x1xf32>
    %93 = arith.mulf %92, %91 : vector<16x1xf32>
    %94 = arith.addf %72, %93 : vector<16x1xf32>
    %95 = vector.shape_cast %94 : vector<16x1xf32> to vector<1x16x1xf32>
    %cst_26 = arith.constant dense<0.000000e+00> : vector<1xf32>
    %96 = vector.multi_reduction <add>, %95, %cst_26 [1, 2] : vector<1x16x1xf32> to vector<1xf32>
    %97 = vector.shape_cast %96 : vector<1xf32> to vector<1x1x1xf32>
    %98 = vector.extract %97[0, 0, 0] : f32 from vector<1x1x1xf32>
    %cst_27 = arith.constant 6.250000e-02 : f32
    %99 = arith.mulf %98, %cst_27 : f32
    %100 = vector.broadcast %99 : f32 to vector<8x128xf32>
    %c0_28 = arith.constant 0 : index
    %c0_29 = arith.constant 0 : index
    %101 = vector.load %arg3[%c0_28, %c0_29] : memref<8x128xf32, #tpu.memory_space<vmem>>, vector<8x128xf32>
    tpu.vector_store %arg3[%c0_28, %c0_29], %100 {strides = array<i32>} : memref<8x128xf32, #tpu.memory_space<vmem>>, vector<8x128xf32>,
    return
  }
}

</mosaic_0001>

<bundles_post_ra>
// kernel: tpu_custom_call.1
= control target key start
LH: loop header
LB: loop body
LE: loop exit
PB: predicated region body
PF: predicated region fallthrough
CT: control target
= control target key end

     0   :  { %8 = vsyncpa [#allocation3], 0  ;;  %s1247_s0 = inlined_call_operand.hbm [shape: f32[64,128], index: 0, kind: input, shape index: {}]   ;;  %s1248_s1 = inlined_call_operand.hbm [shape: f32[128,128], index: 1, kind: input, shape index: {}]   ;;  %s1249_s2 = inlined_call_operand.hbm [shape: f32[64,128], index: 2, kind: input, shape index: {}]   ;;  %s1250_s3 = inlined_call_operand.hbm [shape: f32[8,128], index: 3, kind: output, shape index: {}]  }
   0x1   :  { %9 = vsyncpa [#allocation6], 0 }
   0x2   :  { %10 = vsyncpa [#allocation4], 0  ;;  %s972_s12 = smov [#allocation5]   ;;  %s973_s14 = smov [#allocation2]  }
   0x3   :  { %s28_s13 = sshll.u32 %s972_s12, 4  ;;  %s16_s15 = sshll.u32 %s973_s14, 4  ;;  %s29_s13 = int_to_ptr.vmem [resolvable:$true] %s28_s13  ;;  %s1002_s15 = int_to_ptr.vmem [resolvable:$true] %s16_s15 }
   0x4   :  { %s878_s18 = scalar_lea.hbm %s1248_s1, 2048 }
   0x5   :  { %p879_p0 = scmp.ne.s32.totalorder %s1248_s1, %s878_s18  ;;  %p882_p1 = scmp.lt.u32.totalorder %s878_s18, %s1248_s1 }
   0x7   :  { %p884_p2 = pnand %p882_p1, %p879_p0 }
   0x9   :  { %887 = shalt.err (!%p884_p2)
}
   0xa   :  { %s888_s23 = scalar_lea.vmem %s29_s13, 2048  ;;  %p893_p4 = scmp.lt.s32.totalorder %s29_s13, %s29_s13 }
   0xb   :  { %p889_p3 = scmp.ne.s32.totalorder %s29_s13, %s888_s23  ;;  %p894_p5 = scmp.lt.s32.totalorder %s888_s23, %s888_s23 }
   0xd   :  { %p895_p6 = por %p894_p5, %p893_p4 }
   0xf   :  { %p896_p7 = pnand %p895_p6, %p889_p3 }
  0x11   :  { %899 = shalt.err (!%p896_p7)
}
  0x12   :  { %s974_s24 = smov 128   ;;  %s975_s25 = smov 8  }
  0x13   :  { %34 = dma.hbm_to_vmem [thread:$0]  %s1248_s1, 2048, %s29_s13, [#allocation6], %s974_s24, %s974_s24, %s975_s25  }
  0x14   :  { %s900_s30 = scalar_lea.hbm %s1247_s0, 1024 }
  0x15   :  { %p901_p8 = scmp.ne.s32.totalorder %s1247_s0, %s900_s30  ;;  %p904_p9 = scmp.lt.u32.totalorder %s900_s30, %s1247_s0 }
  0x17   :  { %p906_p10 = pnand %p904_p9, %p901_p8 }
  0x19   :  { %909 = shalt.err (!%p906_p10)
}
  0x1a   :  { %s910_s8 = scalar_lea.vmem %s1002_s15, 1024  ;;  %p915_p12 = scmp.lt.s32.totalorder %s1002_s15, %s1002_s15 }
  0x1b   :  { %p911_p11 = scmp.ne.s32.totalorder %s1002_s15, %s910_s8  ;;  %p916_p13 = scmp.lt.s32.totalorder %s910_s8, %s910_s8 }
  0x1d   :  { %p917_p0 = por %p916_p13, %p915_p12 }
  0x1f   :  { %p918_p1 = pnand %p917_p0, %p911_p11 }
  0x21   :  { %921 = shalt.err (!%p918_p1)
}
  0x22   :  { %22 = dma.hbm_to_vmem [thread:$0]  %s1247_s0, 1024, %s1002_s15, [#allocation3], %s974_s24, %s974_s24, %s975_s25  }
  0x23   :  { %s976_s10 = smov [#allocation7]   ;;  %s922_s14 = scalar_lea.hbm %s1249_s2, 1024 }
  0x24   :  { %s40_s11 = sshll.u32 %s976_s10, 4  ;;  %p923_p2 = scmp.ne.s32.totalorder %s1249_s2, %s922_s14  ;;  %s41_s11 = int_to_ptr.vmem [resolvable:$true] %s40_s11 }
  0x25   :  { %p926_p3 = scmp.lt.u32.totalorder %s922_s14, %s1249_s2 }
  0x27   :  { %p928_p4 = pnand %p926_p3, %p923_p2 }
  0x29   :  { %931 = shalt.err (!%p928_p4)
}
  0x2a   :  { %s932_s20 = scalar_lea.vmem %s41_s11, 1024  ;;  %p937_p6 = scmp.lt.s32.totalorder %s41_s11, %s41_s11 }
  0x2b   :  { %p933_p5 = scmp.ne.s32.totalorder %s41_s11, %s932_s20  ;;  %p938_p7 = scmp.lt.s32.totalorder %s932_s20, %s932_s20 }
  0x2d   :  { %p939_p8 = por %p938_p7, %p937_p6 }
  0x2f   :  { %p940_p9 = pnand %p939_p8, %p933_p5 }
  0x31   :  { %943 = shalt.err (!%p940_p9)
}
  0x32   :  { %46 = dma.hbm_to_vmem [thread:$0]  %s1249_s2, 1024, %s41_s11, [#allocation6], %s974_s24, %s974_s24, %s975_s25  }
  0x33   :  { %966 = dma.done.wait [#allocation3], 1024  }
  0x34   :  { %967 = vsyncadd [#allocation3], 4294966272 }
  0x35   :  { %968 = dma.done.wait [#allocation6], 3072  }
  0x36   :  { %969 = vsyncadd [#allocation6], 4294964224  ;;  %v64_v0 = vld [vmem:[#allocation5] sm:$0xff]  ;;  %v65_v1 = vld [vmem:[#allocation5 + $0x8] sm:$0xff]  ;;  %vm193_vm0 = vcmask 523264   ;;  %s977_s2 = smov 64  }
  0x37   :  { %v66_v2 = vld [vmem:[#allocation5 + $0x10] sm:$0xff]  ;;  %v770_v3 = vpack.c.bf16 %v65_v1, %v64_v0  ;;  %v67_v4 = vld [vmem:[#allocation5 + $0x18] sm:$0xff]  ;;  %v68_v6 = vld [vmem:[#allocation5 + $0x20] sm:$0xff]  ;;  %s978_s21 = smov 96   ;;  %vm329_vm1 = vcmask 261120   ;;  %s979_s22 = smov 1  }
  0x38   :  { %v774_v5 = vpack.c.bf16 %v67_v4, %v66_v2  ;;  %v69_v7 = vld [vmem:[#allocation5 + $0x28] sm:$0xff]  ;;  %v56_v9 = vld [vmem:[#allocation2] sm:$0xff]  ;;  %v70_v10 = vld [vmem:[#allocation5 + $0x30] sm:$0xff]  ;;  %s980_s23 = smov 63   ;;  %vm618_vm12 = vcmask 7168   ;;  %s981_s24 = smov [#allocation8]  }
  0x39   :  { %771 = vmatprep.subr.bf16.mxu0 %v770_v3  ;;  %v778_v8 = vpack.c.bf16 %v69_v7, %v68_v6  ;;  %v71_v11 = vld [vmem:[#allocation5 + $0x38] sm:$0xff]  ;;  %730 = vmatprep.mubr.f32.mxu0 %v56_v9  ;;  %v72_v13 = vld [vmem:[#allocation5 + $0x40] sm:$0xff]  ;;  %v73_v14 = vld [vmem:[#allocation5 + $0x48] sm:$0xff]  ;;  %s640_s25 = sshll.u32 %s981_s24, 4  ;;  %s641_s25 = int_to_ptr.vmem [resolvable:$true] %s640_s25 }
  0x3a   :  { %773 = vmatpush3.bf16.msra.mxu0 %v770_v3  ;;  %v782_v12 = vpack.c.bf16 %v71_v11, %v70_v10  ;;  %v786_v15 = vpack.c.bf16 %v73_v14, %v72_v13  ;;  %v74_v16 = vld [vmem:[#allocation5 + $0x50] sm:$0xff]  ;;  %v75_v17 = vld [vmem:[#allocation5 + $0x58] sm:$0xff]  ;;  %v76_v19 = vld [vmem:[#allocation5 + $0x60] sm:$0xff]  ;;  %s944_s28 = scalar_lea.vmem %s641_s25, 128  ;;  %p949_p11 = scmp.lt.s32.totalorder %s641_s25, %s641_s25 }
  0x3b   :  { %775 = vmatprep.subr.bf16.mxu0 %v774_v5  ;;  %v790_v18 = vpack.c.bf16 %v75_v17, %v74_v16  ;;  %v77_v20 = vld [vmem:[#allocation5 + $0x68] sm:$0xff]  ;;  %v78_v22 = vld [vmem:[#allocation5 + $0x70] sm:$0xff]  ;;  %v79_v23 = vld [vmem:[#allocation5 + $0x78] sm:$0xff]  ;;  %p945_p10 = scmp.ne.s32.totalorder %s641_s25, %s944_s28  ;;  %p950_p12 = scmp.lt.s32.totalorder %s944_s28, %s944_s28 }
  0x3c   :  { %v794_v21 = vpack.c.bf16 %v77_v20, %v76_v19  ;;  %v798_v24 = vpack.c.bf16 %v79_v23, %v78_v22  ;;  %v57_v25 = vld [vmem:[#allocation2 + $0x8] sm:$0xff]  ;;  %v58_v26 = vld [vmem:[#allocation2 + $0x10] sm:$0xff]  ;;  %v59_v27 = vld [vmem:[#allocation2 + $0x18] sm:$0xff] }
  0x3d   :  { %v60_v28 = vld [vmem:[#allocation2 + $0x20] sm:$0xff]  ;;  %v61_v29 = vld [vmem:[#allocation2 + $0x28] sm:$0xff]  ;;  %v62_v30 = vld [vmem:[#allocation2 + $0x30] sm:$0xff]  ;;  %p951_p13 = por %p950_p12, %p949_p11 }
  0x3e   :  { %777 = vmatpush3.bf16.msra.mxu0 %v774_v5  ;;  %v63_v31 = vld [vmem:[#allocation2 + $0x38] sm:$0xff]  ;;  %v1054_v32 = vld [vmem:[#allocation7] sm:$0xff]  ;;  %v1058_v45 = vld [vmem:[#allocation7 + $0x8] sm:$0xff] }
  0x3f   :  { %779 = vmatprep.subr.bf16.mxu0 %v778_v8  ;;  %758 = vmatprep.mubr.msk.f32.mxu1 %vm193_vm0, %v1054_v32  ;;  %v187_v46 = vld [vmem:[#allocation7 + $0x10] sm:$0xff]  ;;  %v188_v47 = vld [vmem:[#allocation7 + $0x18] sm:$0xff]  ;;  %v189_v48 = vld [vmem:[#allocation7 + $0x20] sm:$0xff]  ;;  %p952_p0 = pnand %p951_p13, %p945_p10 }
  0x40   :  { %v190_v49 = vld [vmem:[#allocation7 + $0x28] sm:$0xff]  ;;  %v191_v50 = vld [vmem:[#allocation7 + $0x30] sm:$0xff]  ;;  %v192_v51 = vld [vmem:[#allocation7 + $0x38] sm:$0xff] }
  0x42   :  { %781 = vmatpush3.bf16.msra.mxu0 %v778_v8 }
  0x43   :  { %783 = vmatprep.subr.bf16.mxu0 %v782_v12 }
  0x46   :  { %785 = vmatpush3.bf16.msra.mxu0 %v782_v12 }
  0x47   :  { %787 = vmatprep.subr.bf16.mxu0 %v786_v15 }
  0x4a   :  { %789 = vmatpush3.bf16.msra.mxu0 %v786_v15 }
  0x4b   :  { %791 = vmatprep.subr.bf16.mxu0 %v790_v18 }
  0x4e   :  { %793 = vmatpush3.bf16.msra.mxu0 %v790_v18 }
  0x4f   :  { %795 = vmatprep.subr.bf16.mxu0 %v794_v21 }
  0x52   :  { %797 = vmatpush3.bf16.msra.mxu0 %v794_v21 }
  0x53   :  { %799 = vmatprep.subr.bf16.mxu0 %v798_v24 }
  0x56   :  { %801 = vmatpush3.bf16.msra.mxu0 %v798_v24 }
  0x59   :  { %731 = vmatmul.mubr.f32.vlgmr.msra.gmra.mrb[0].mxu0 %v57_v25 }
  0x5a   :  { %733 = vmatprep.mubr.f32.mxu0 %v58_v26 }
  0x5d   :  { %734 = vmatmul.mubr.f32.gmra.mrb[2].mxu0 %v59_v27 }
  0x5e   :  { %736 = vmatprep.mubr.f32.mxu0 %v60_v28 }
  0x61   :  { %737 = vmatmul.mubr.f32.gmra.mrb[4].mxu0 %v61_v29 }
  0x62   :  { %739 = vmatprep.mubr.f32.mxu0 %v62_v30 }
  0x65   :  { %740 = vmatmul.mubr.f32.gmra.mrb[6].mxu0 %v63_v31 }
 0x12c   :  { %v732_v33 = vpop.f32.mrb[0].mxu0 }
 0x12d   :  { %v146_v34 = vpop.f32.mrb[1].mxu0 }
 0x12e   :  { %v802_v35 = vpack.c.bf16 %v732_v33, %v146_v34 }
 0x130   :  { %v735_v36 = vpop.f32.mrb[2].mxu0  ;;  %803 = vmatprep.subr.bf16.mxu1 %v802_v35 }
 0x131   :  { %v156_v37 = vpop.f32.mrb[3].mxu0  ;;  %805 = vmatpush3.bf16.msra.mxu1 %v802_v35 }
 0x132   :  { %v806_v38 = vpack.c.bf16 %v735_v36, %v156_v37 }
 0x134   :  { %v738_v39 = vpop.f32.mrb[4].mxu0  ;;  %807 = vmatprep.subr.bf16.mxu1 %v806_v38 }
 0x135   :  { %v166_v40 = vpop.f32.mrb[5].mxu0  ;;  %809 = vmatpush3.bf16.msra.mxu1 %v806_v38 }
 0x136   :  { %v810_v41 = vpack.c.bf16 %v738_v39, %v166_v40 }
 0x138   :  { %v741_v42 = vpop.f32.mrb[6].mxu0  ;;  %811 = vmatprep.subr.bf16.mxu1 %v810_v41 }
 0x139   :  { %v176_v43 = vpop.f32.mrb[7].mxu0  ;;  %813 = vmatpush3.bf16.msra.mxu1 %v810_v41 }
 0x13a   :  { %v814_v44 = vpack.c.bf16 %v741_v42, %v176_v43 }
 0x13c   :  { %815 = vmatprep.subr.bf16.mxu1 %v814_v44 }
 0x13d   :  { %817 = vmatpush3.bf16.msra.mxu1 %v814_v44 }
 0x140   :  { %759 = vmatmul.mubr.msk.f32.vlgmr.msra.gmra.mrb[0].mxu1 %vm193_vm0, %v1058_v45 }
 0x141   :  { %761 = vmatprep.mubr.msk.f32.mxu1 %vm193_vm0, %v187_v46 }
 0x144   :  { %762 = vmatmul.mubr.msk.f32.gmra.mrb[2].mxu1 %vm193_vm0, %v188_v47 }
 0x145   :  { %764 = vmatprep.mubr.msk.f32.mxu1 %vm193_vm0, %v189_v48 }
 0x148   :  { %765 = vmatmul.mubr.msk.f32.gmra.mrb[4].mxu1 %vm193_vm0, %v190_v49 }
 0x149   :  { %767 = vmatprep.mubr.msk.f32.mxu1 %vm193_vm0, %v191_v50 }
 0x14c   :  { %768 = vmatmul.mubr.msk.f32.gmra.mrb[6].mxu1 %vm193_vm0, %v192_v51 }
 0x213   :  { %v760_v52 = vpop.f32.mrb[0].mxu1 }
 0x214   :  { %v284_v53 = vpop.f32.mrb[1].mxu1 }
 0x217   :  { %v763_v54 = vpop.f32.mrb[2].mxu1 }
 0x218   :  { %v324_v55 = vmul.f32 %v763_v54, %v760_v52  ;;  %v294_v56 = vpop.f32.mrb[3].mxu1 }
 0x219   :  { %v323_v57 = vmul.f32 %v294_v56, %v284_v53 }
 0x21a   :  { %v333_v24 = vsel %vm329_vm1, %v324_v55, 0.0 }
 0x21b   :  { %v766_v58 = vpop.f32.mrb[4].mxu1  ;;  %v330_v21 = vsel %vm329_vm1, %v323_v57, 0.0 }
 0x21c   :  { %v326_v59 = vmul.f32 %v766_v58, %v760_v52  ;;  %v304_v60 = vpop.f32.mrb[5].mxu1 }
 0x21d   :  { %v325_v61 = vmul.f32 %v304_v60, %v284_v53 }
 0x21e   :  { %396 = vrot.lane.b32.xlu1 %v326_v59, %s977_s2  ;;  %v339_v11 = vsel %vm329_vm1, %v326_v59, 0.0 }
 0x21f   :  { %358 = vrot.lane.b32.xlu0 %v325_v61, %s978_s21  ;;  %v769_v62 = vpop.f32.mrb[6].mxu1  ;;  %v336_v9 = vsel %vm329_vm1, %v325_v61, 0.0 }
 0x220   :  { %v328_v63 = vmul.f32 %v769_v62, %v760_v52  ;;  %v314_v0 = vpop.f32.mrb[7].mxu1 }
 0x221   :  { %v327_v1 = vmul.f32 %v314_v0, %v284_v53 }
 0x222   :  { %356 = vrot.lane.b32.xlu1 %v324_v55, %s978_s21  ;;  %v345_v15 = vsel %vm329_vm1, %v328_v63, 0.0 }
 0x223   :  { %360 = vrot.lane.b32.xlu0 %v326_v59, %s978_s21  ;;  %v342_v12 = vsel %vm329_vm1, %v327_v1, 0.0 }
 0x226   :  { %364 = vrot.lane.b32.xlu1 %v328_v63, %s978_s21 }
 0x227   :  { %354 = vrot.lane.b32.xlu0 %v323_v57, %s978_s21 }
 0x22a   :  { %400 = vrot.lane.b32.xlu1 %v328_v63, %s977_s2 }
 0x22b   :  { %394 = vrot.lane.b32.xlu0 %v325_v61, %s977_s2 }
 0x22e   :  { %362 = vrot.lane.b32.xlu1 %v327_v1, %s978_s21 }
 0x22f   :  { %398 = vrot.lane.b32.xlu0 %v327_v1, %s977_s2 }
 0x290   :  { %v397_v6 = vpop.permute.xlu1 %396 }
 0x291   :  { %v359_v2 = vpop.permute.xlu0 %358  ;;  %v417_v17 = vsel %vm329_vm1, %v397_v6, 0.0 }
 0x292   :  { %v378_v3 = vsel %vm329_vm1, %v359_v2, 0.0 }
 0x293   :  { %379 = vadd.xlane.f32.xlu0 %v378_v3 }
 0x294   :  { %v357_v7 = vpop.permute.xlu1 %356 }
 0x295   :  { %v361_v4 = vpop.permute.xlu0 %360  ;;  %v375_v25 = vsel %vm329_vm1, %v357_v7, 0.0 }
 0x296   :  { %v381_v5 = vsel %vm329_vm1, %v361_v4, 0.0 }
 0x297   :  { %382 = vadd.xlane.f32.xlu1 %v381_v5 }
 0x298   :  { %v365_v10 = vpop.permute.xlu1 %364 }
 0x299   :  { %v355_v8 = vpop.permute.xlu0 %354  ;;  %v387_v18 = vsel %vm329_vm1, %v365_v10, 0.0 }
 0x29a   :  { %v372_v23 = vsel %vm329_vm1, %v355_v8, 0.0 }
 0x29c   :  { %v401_v14 = vpop.permute.xlu1 %400 }
 0x29d   :  { %v395_v13 = vpop.permute.xlu0 %394  ;;  %v423_v22 = vsel %vm329_vm1, %v401_v14, 0.0 }
 0x29e   :  { %v414_v16 = vsel %vm329_vm1, %v395_v13, 0.0 }
 0x2a0   :  { %v363_v19 = vpop.permute.xlu1 %362 }
 0x2a1   :  { %v384_v20 = vsel %vm329_vm1, %v363_v19, 0.0  ;;  %v399_v26 = vpop.permute.xlu0 %398 }
 0x2a2   :  { %v420_v38 = vsel %vm329_vm1, %v399_v26, 0.0 }
 0x2a8   :  { %392 = vrot.lane.b32.xlu1 %v324_v55, %s977_s2 }
 0x2a9   :  { %390 = vrot.lane.b32.xlu0 %v323_v57, %s977_s2 }
 0x2c8   :  { %337 = vadd.xlane.f32.xlu0 %v336_v9 }
 0x2cc   :  { %340 = vadd.xlane.f32.xlu0 %v339_v11  ;;  %343 = vadd.xlane.f32.xlu1 %v342_v12 }
 0x2d0   :  { %346 = vadd.xlane.f32.xlu0 %v345_v15  ;;  %415 = vadd.xlane.f32.xlu1 %v414_v16 }
 0x2d4   :  { %418 = vadd.xlane.f32.xlu0 %v417_v17  ;;  %388 = vadd.xlane.f32.xlu1 %v387_v18 }
 0x2d8   :  { %385 = vadd.xlane.f32.xlu0 %v384_v20  ;;  %331 = vadd.xlane.f32.xlu1 %v330_v21 }
 0x2dc   :  { %424 = vadd.xlane.f32.xlu0 %v423_v22  ;;  %373 = vadd.xlane.f32.xlu1 %v372_v23 }
 0x2e0   :  { %334 = vadd.xlane.f32.xlu0 %v333_v24 }
 0x2e4   :  { %376 = vadd.xlane.f32.xlu0 %v375_v25 }
 0x320   :  { %v380_v27 = vpop.xlane.xlu0 %379 }
 0x321   :  { %v426_v28 = vsub.f32 0.0, %v380_v27 }
 0x323   :  { %v428_v29 = vmul.f32 1.442695, %v426_v28 }
 0x324   :  { %v391_v30 = vpop.permute.xlu0 %390  ;;  %v383_v31 = vpop.xlane.xlu1 %382 }
 0x325   :  { %830 = vpow2.f32 %v428_v29  ;;  %v427_v33 = vsub.f32 0.0, %v383_v31  ;;  %v408_v34 = vsel %vm329_vm1, %v391_v30, 0.0 }
 0x326   :  { %409 = vadd.xlane.f32.xlu1 %v408_v34 }
 0x327   :  { %v430_v35 = vmul.f32 1.442695, %v427_v33 }
 0x328   :  { %v393_v36 = vpop.permute.xlu1 %392 }
 0x329   :  { %832 = vpow2.f32 %v430_v35  ;;  %v411_v37 = vsel %vm329_vm1, %v393_v36, 0.0 }
 0x32a   :  { %412 = vadd.xlane.f32.xlu0 %v411_v37  ;;  %421 = vadd.xlane.f32.xlu1 %v420_v38 }
 0x32f   :  { %v831_v39 = vpop.eup %830 }
 0x330   :  { %v432_v40 = vadd.f32 1.0, %v831_v39 }
 0x332   :  { %834 = vrcp.f32 %v432_v40 }
 0x333   :  { %v833_v41 = vpop.eup %832 }
 0x334   :  { %v433_v42 = vadd.f32 1.0, %v833_v41 }
 0x336   :  { %836 = vrcp.f32 %v433_v42 }
 0x33c   :  { %v835_v43 = vpop.eup %834 }
 0x33d   :  { %v438_v44 = vadd.f32 %v835_v43, %v1054_v32 }
 0x33f   :  { %456 = vrot.lane.b32.xlu1 %v438_v44, %s979_s22 }
 0x340   :  { %v837_v46 = vpop.eup %836 }
 0x341   :  { %v439_v47 = vadd.f32 %v837_v46, %v1058_v45 }
 0x343   :  { %458 = vrot.lane.b32.xlu0 %v439_v47, %s979_s22 }
 0x355   :  { %v1088_v48 = vpop.xlane.xlu0 %337 }
 0x359   :  { %v1090_v49 = vpop.xlane.xlu0 %340  ;;  %v1092_v50 = vpop.xlane.xlu1 %343 }
 0x35d   :  { %v1094_v51 = vpop.xlane.xlu0 %346  ;;  %v1096_v52 = vpop.xlane.xlu1 %415 }
 0x361   :  { %v1098_v53 = vpop.xlane.xlu0 %418  ;;  %v389_v54 = vpop.xlane.xlu1 %388 }
 0x362   :  { %v441_v56 = vsub.f32 0.0, %v389_v54  ;;  %v1106_v4 = vsub.f32 %v383_v31, %v389_v54 }
 0x364   :  { %v444_v58 = vmul.f32 1.442695, %v441_v56  ;;  %v577_v11 = vand.u32 2147483647, %v1106_v4 }
 0x365   :  { %v386_v55 = vpop.xlane.xlu0 %385  ;;  %v1100_v60 = vpop.xlane.xlu1 %331 }
 0x366   :  { %v440_v57 = vsub.f32 0.0, %v386_v55  ;;  %838 = vpow2.f32 %v444_v58  ;;  %v1108_v6 = vsub.f32 %v380_v27, %v386_v55  ;;  %v504_v8 = vsub.f32 0.0, %v1100_v60 }
 0x367   :  { %v579_v17 = vsub.f32 0.0, %v577_v11 }
 0x368   :  { %v442_v59 = vmul.f32 1.442695, %v440_v57  ;;  %v576_v13 = vand.u32 2147483647, %v1108_v6  ;;  %v508_v14 = vand.u32 2147483647, %v504_v8 }
 0x369   :  { %v425_v61 = vpop.xlane.xlu0 %424  ;;  %v374_v62 = vpop.xlane.xlu1 %373  ;;  %v582_v24 = vmul.f32 1.442695, %v579_v17 }
 0x36a   :  { %840 = vpow2.f32 %v442_v59  ;;  %v1104_v2 = vsub.f32 %v386_v55, %v374_v62  ;;  %v578_v19 = vsub.f32 0.0, %v576_v13  ;;  %v510_v20 = vsub.f32 0.0, %v508_v14 }
 0x36c   :  { %v544_v9 = vand.u32 2147483647, %v1104_v2  ;;  %v580_v26 = vmul.f32 1.442695, %v578_v19  ;;  %v512_v28 = vmul.f32 1.442695, %v510_v20 }
 0x36d   :  { %v1102_v63 = vpop.xlane.xlu0 %334  ;;  %v542_v20 = vmax.f32 %v1104_v2, 0.0 }
 0x36e   :  { %v505_v10 = vsub.f32 0.0, %v1102_v63  ;;  %v546_v15 = vsub.f32 0.0, %v544_v9 }
 0x370   :  { %v839_v0 = vpop.eup %838  ;;  %v509_v16 = vand.u32 2147483647, %v505_v10  ;;  %v548_v21 = vmul.f32 1.442695, %v546_v15  ;;  %v574_v15 = vmax.f32 %v1108_v6, 0.0 }
 0x371   :  { %v447_v3 = vadd.f32 1.0, %v839_v0  ;;  %v377_v7 = vpop.xlane.xlu0 %376 }
 0x372   :  { %v1114_v12 = vsub.f32 %v389_v54, %v377_v7  ;;  %v511_v22 = vsub.f32 0.0, %v509_v16 }
 0x373   :  { %842 = vrcp.f32 %v447_v3 }
 0x374   :  { %v841_v1 = vpop.eup %840  ;;  %v545_v18 = vand.u32 2147483647, %v1114_v12  ;;  %v514_v30 = vmul.f32 1.442695, %v511_v22 }
 0x375   :  { %v446_v5 = vadd.f32 1.0, %v841_v1 }
 0x376   :  { %v547_v25 = vsub.f32 0.0, %v545_v18  ;;  %v506_v18 = vmax.f32 %v504_v8, 0.0 }
 0x377   :  { %844 = vrcp.f32 %v446_v5 }
 0x378   :  { %846 = vpow2.f32 %v548_v21  ;;  %v550_v34 = vmul.f32 1.442695, %v547_v25 }
 0x379   :  { %848 = vpow2.f32 %v582_v24 }
 0x37a   :  { %850 = vpow2.f32 %v580_v26 }
 0x37b   :  { %852 = vpow2.f32 %v512_v28 }
 0x37c   :  { %854 = vpow2.f32 %v514_v30 }
 0x37d   :  { %v843_v27 = vpop.eup %842  ;;  %856 = vpow2.f32 %v550_v34 }
 0x37e   :  { %v453_v35 = vadd.f32 %v843_v27, %v1058_v45 }
 0x381   :  { %v845_v29 = vpop.eup %844 }
 0x382   :  { %v452_v36 = vadd.f32 %v845_v29, %v1054_v32  ;;  %v1132_v46 = vpop.eup %846 }
 0x383   :  { %v555_v11 = vmul.f32 -0.5, %v1132_v46 }
 0x385   :  { %v556_v22 = vadd.f32 1.0, %v555_v11 }
 0x3b3   :  { %v410_v23 = vpop.xlane.xlu1 %409 }
 0x3b4   :  { %v468_v45 = vadd.f32 %v410_v23, %v1100_v60  ;;  %v507_v23 = vmax.f32 %v505_v10, 0.0  ;;  %v558_v60 = vand.u32 2147483647, %v1132_v46 }
 0x3b6   :  { %vm1184_vm4 = vcmp.lt.f32.partialorder %v558_v60, 0.0004427343 }
 0x3b7   :  { %v413_v31 = vpop.xlane.xlu0 %412  ;;  %v422_v33 = vpop.xlane.xlu1 %421 }
 0x3b8   :  { %v469_v32 = vadd.f32 %v413_v31, %v1102_v63 }
 0x3bb   :  { %v459_v37 = vpop.permute.xlu0 %458  ;;  %v457_v38 = vpop.permute.xlu1 %456 }
 0x3bc   :  { %vm463_vm2 = vcmp.lt.f32.partialorder %v453_v35, %v459_v37  ;;  %vm462_vm3 = vcmp.lt.f32.partialorder %v452_v36, %v457_v38  ;;  %v557_v36 = vmul.f32 %v1132_v46, %v556_v22 }
 0x3bd   :  { %v465_v39 = vsel %vm463_vm2, %v1090_v49, %v1094_v51  ;;  %v467_v40 = vsel %vm463_vm2, %v1098_v53, %v425_v61  ;;  %v464_v41 = vsel %vm462_vm3, %v1088_v48, %v1092_v50  ;;  %v466_v42 = vsel %vm462_vm3, %v1096_v52, %v422_v33  ;;  %v1138_v49 = vpop.eup %848 }
 0x3be   :  { %v471_v43 = vadd.f32 %v467_v40, %v465_v39  ;;  %v470_v44 = vadd.f32 %v466_v42, %v464_v41  ;;  %v1142_v50 = vpop.eup %850  ;;  %v552_v52 = vadd.f32 1.0, %v1132_v46  ;;  %v593_v5 = vadd.f32 1.0, %v1138_v49 }
 0x3bf   :  { %v1145_v53 = vpop.eup %852  ;;  %v584_v59 = vadd.f32 1.0, %v1142_v50  ;;  %v596_v7 = vmul.f32 -0.5, %v1138_v49  ;;  %v587_v9 = vmul.f32 -0.5, %v1142_v50  ;;  %v599_v26 = vand.u32 2147483647, %v1138_v49 }
 0x3c0   :  { %v1134_v47 = vsub.f32 %v471_v43, %v469_v32  ;;  %v1136_v54 = vsub.f32 %v470_v44, %v468_v45  ;;  %v1147_v57 = vpop.eup %854  ;;  %v516_v0 = vadd.f32 1.0, %v1145_v53  ;;  %858 = vlog2.f32 %v552_v52 }
 0x3c1   :  { %v1149_v58 = vpop.eup %856  ;;  %v525_v1 = vadd.f32 1.0, %v1147_v57  ;;  %v597_v14 = vadd.f32 1.0, %v596_v7  ;;  %v588_v17 = vadd.f32 1.0, %v587_v9  ;;  %v519_v19 = vmul.f32 -0.5, %v1145_v53 }
 0x3c2   :  { %v477_v51 = vand.u32 2147483647, %v1134_v47  ;;  %v476_v48 = vand.u32 2147483647, %v1136_v54  ;;  %v561_v3 = vadd.f32 1.0, %v1149_v58  ;;  %v528_v24 = vmul.f32 -0.5, %v1147_v57 }
 0x3c3   :  { %v564_v8 = vmul.f32 -0.5, %v1149_v58  ;;  %v1177_v28 = vmul.f32 %v1138_v49, %v597_v14  ;;  %v590_v63 = vand.u32 2147483647, %v1142_v50  ;;  %v589_v30 = vmul.f32 %v1142_v50, %v588_v17 }
 0x3c4   :  { %v479_v55 = vsub.f32 0.0, %v477_v51  ;;  %v478_v56 = vsub.f32 0.0, %v476_v48  ;;  %v520_v31 = vadd.f32 1.0, %v519_v19  ;;  %v522_v33 = vand.u32 2147483647, %v1145_v53 }
 0x3c5   :  { %v529_v37 = vadd.f32 1.0, %v528_v24  ;;  %v531_v38 = vand.u32 2147483647, %v1147_v57  ;;  %v565_v42 = vadd.f32 1.0, %v564_v8  ;;  %v567_v44 = vand.u32 2147483647, %v1149_v58 }
 0x3c6   :  { %v482_v61 = vmul.f32 1.442695, %v479_v55  ;;  %v480_v62 = vmul.f32 1.442695, %v478_v56  ;;  %vm1193_vm5 = vcmp.lt.f32.partialorder %v590_v63, 0.0004427343  ;;  %v521_v51 = vmul.f32 %v1145_v53, %v520_v31 }
 0x3c7   :  { %vm1198_vm6 = vcmp.lt.f32.partialorder %v522_v33, 0.0004427343  ;;  %v530_v56 = vmul.f32 %v1147_v57, %v529_v37  ;;  %vm1205_vm7 = vcmp.lt.f32.partialorder %v531_v38, 0.0004427343  ;;  %v566_v53 = vmul.f32 %v1149_v58, %v565_v42 }
 0x3c8   :  { %860 = vpow2.f32 %v482_v61  ;;  %vm1214_vm8 = vcmp.lt.f32.partialorder %v567_v44, 0.0004427343  ;;  %vm1219_vm9 = vcmp.lt.f32.partialorder %v599_v26, 0.0004427343  ;;  %v575_v14 = vmax.f32 %v1106_v4, 0.0 }
 0x3c9   :  { %862 = vpow2.f32 %v480_v62  ;;  %v475_v4 = vmax.f32 %v1134_v47, 0.0 }
 0x3ca   :  { %864 = vlog2.f32 %v584_v59  ;;  %v859_v13 = vpop.eup %858 }
 0x3cb   :  { %866 = vlog2.f32 %v516_v0  ;;  %v554_v10 = vmul.f32 0.6931472, %v859_v13 }
 0x3cc   :  { %868 = vlog2.f32 %v525_v1 }
 0x3cd   :  { %870 = vlog2.f32 %v561_v3  ;;  %v560_v32 = vsel %vm1184_vm4, %v557_v36, %v554_v10 }
 0x3ce   :  { %872 = vlog2.f32 %v593_v5  ;;  %v570_v62 = vadd.f32 %v560_v32, %v542_v20  ;;  %v543_v20 = vmax.f32 %v1114_v12, 0.0 }
 0x3d2   :  { %v1160_v16 = vpop.eup %860 }
 0x3d3   :  { %v1166_v21 = vpop.eup %862  ;;  %v493_v6 = vadd.f32 1.0, %v1160_v16  ;;  %v496_v45 = vmul.f32 -0.5, %v1160_v16  ;;  %v499_v57 = vand.u32 2147483647, %v1160_v16 }
 0x3d4   :  { %v865_v25 = vpop.eup %864  ;;  %v484_v27 = vadd.f32 1.0, %v1166_v21  ;;  %v487_v46 = vmul.f32 -0.5, %v1166_v21  ;;  %v490_v58 = vand.u32 2147483647, %v1166_v21 }
 0x3d5   :  { %v867_v2 = vpop.eup %866  ;;  %874 = vlog2.f32 %v493_v6  ;;  %v586_v35 = vmul.f32 0.6931472, %v865_v25  ;;  %v497_v0 = vadd.f32 1.0, %v496_v45  ;;  %vm500_vm10 = vcmp.lt.f32.partialorder %v499_v57, 0.0004427343 }
 0x3d6   :  { %v869_v29 = vpop.eup %868  ;;  %876 = vlog2.f32 %v484_v27  ;;  %v518_v40 = vmul.f32 0.6931472, %v867_v2  ;;  %v488_v5 = vadd.f32 1.0, %v487_v46  ;;  %v474_v27 = vmax.f32 %v1136_v54, 0.0 }
 0x3d7   :  { %v871_v34 = vpop.eup %870  ;;  %v527_v43 = vmul.f32 0.6931472, %v869_v29  ;;  %v592_v55 = vsel %vm1193_vm5, %v589_v30, %v586_v35  ;;  %vm491_vm11 = vcmp.lt.f32.partialorder %v490_v58, 0.0004427343 }
 0x3d8   :  { %v873_v39 = vpop.eup %872  ;;  %v563_v50 = vmul.f32 0.6931472, %v871_v34  ;;  %v524_v61 = vsel %vm1198_vm6, %v521_v51, %v518_v40  ;;  %v602_v9 = vadd.f32 %v592_v55, %v574_v15  ;;  %v498_v15 = vmul.f32 %v1160_v16, %v497_v0 }
 0x3d9   :  { %v595_v52 = vmul.f32 0.6931472, %v873_v39  ;;  %v533_v1 = vsel %vm1205_vm7, %v530_v56, %v527_v43  ;;  %v534_v19 = vadd.f32 %v524_v61, %v506_v18  ;;  %v489_v8 = vmul.f32 %v1166_v21, %v488_v5 }
 0x3da   :  { %v569_v11 = vsel %vm1214_vm8, %v566_v53, %v563_v50  ;;  %v535_v24 = vadd.f32 %v533_v1, %v507_v23  ;;  %v604_v6 = vadd.f32 %v602_v9, %v570_v62 }
 0x3db   :  { %v601_v17 = vsel %vm1219_vm9, %v1177_v28, %v595_v52  ;;  %v571_v26 = vadd.f32 %v569_v11, %v543_v20  ;;  %v536_v12 = vmul.f32 0.1, %v534_v19 }
 0x3dc   :  { %v603_v28 = vadd.f32 %v601_v17, %v575_v14  ;;  %v537_v10 = vmul.f32 0.1, %v535_v24  ;;  %v606_v30 = vmul.f32 0.05, %v604_v6 }
 0x3de   :  { %v605_v16 = vadd.f32 %v603_v28, %v571_v26 }
 0x3df   :  { %v875_v13 = vpop.eup %874 }
 0x3e0   :  { %v877_v22 = vpop.eup %876  ;;  %v495_v25 = vmul.f32 0.6931472, %v875_v13  ;;  %v607_v21 = vmul.f32 0.05, %v605_v16 }
 0x3e1   :  { %v486_v60 = vmul.f32 0.6931472, %v877_v22 }
 0x3e2   :  { %v501_v2 = vsel %vm500_vm10, %v498_v15, %v495_v25 }
 0x3e3   :  { %v492_v18 = vsel %vm491_vm11, %v489_v8, %v486_v60  ;;  %v503_v23 = vadd.f32 %v501_v2, %v475_v4 }
 0x3e4   :  { %v502_v63 = vadd.f32 %v492_v18, %v474_v27 }
 0x3e5   :  { %v539_v33 = vadd.f32 %v537_v10, %v503_v23 }
 0x3e6   :  { %v538_v29 = vadd.f32 %v536_v12, %v502_v63 }
 0x3e7   :  { %v609_v34 = vadd.f32 %v607_v21, %v539_v33 }
 0x3e8   :  { %v608_v31 = vadd.f32 %v606_v30, %v538_v29 }
 0x3ea   :  { %612 = vrot.lane.b32.xlu1 %v608_v31, %s980_s23 }
 0x3ee   :  { %614 = vrot.lane.b32.xlu1 %v609_v34, %s980_s23 }
 0x45c   :  { %v613_v47 = vpop.permute.xlu1 %612 }
 0x45d   :  { %v619_v35 = vsel %vm618_vm12, %v613_v47, 0.0 }
 0x460   :  { %v615_v54 = vpop.permute.xlu1 %614 }
 0x461   :  { %v620_v36 = vsel %vm618_vm12, %v615_v54, 0.0 }
 0x462   :  { %v621_v37 = vadd.f32 %v620_v36, %v619_v35 }
 0x464   :  { %622 = vadd.xlane.f32.xlu0 %v621_v37 }
 0x4f1   :  { %v623_v38 = vpop.xlane.xlu0 %622 }
 0x4f2   :  { %v624_v39 = vrot.slane %v623_v38, 4 }
 0x4f4   :  { %v625_v40 = vadd.f32 %v624_v39, %v623_v38 }
 0x4f6   :  { %v626_v41 = vrot.slane %v625_v40, 2 }
 0x4f8   :  { %v627_v42 = vadd.f32 %v626_v41, %v625_v40 }
 0x4fa   :  { %v628_v45 = vrot.slane %v627_v42, 1 }
 0x4fc   :  { %v629_v32 = vadd.f32 %v628_v45, %v627_v42 }
 0x4fe   :  { %818 = vpush %v629_v32 }
 0x52f   :  { %s819_s26 = spop %818 }
 0x530   :  { %s631_s27 = smul.f32 0.0625, %s819_s26 }
 0x532   :  { %v632_v43 = vstv %s631_s27 }
 0x533   :  { %633 = vst [vmem:[#allocation8] sm:$0xff] %v632_v43 }
 0x534   :  { %955 = shalt.err (!%p952_p0)
}
 0x535   :  { %s956_s4 = scalar_lea.hbm %s1250_s3, 128 }
 0x536   :  { %p957_p1 = scmp.ne.s32.totalorder %s1250_s3, %s956_s4  ;;  %p960_p2 = scmp.lt.u32.totalorder %s956_s4, %s1250_s3 }
 0x538   :  { %p962_p3 = pnand %p960_p2, %p957_p1 }
 0x53a   :  { %965 = shalt.err (!%p962_p3)
}
 0x53b   :  { %643 = dma.vmem_to_hbm [thread:$0]  %s641_s25, 128, %s1250_s3, [#allocation4]  }
 0x53c   :  { %970 = dma.done.wait [#allocation4], 128  }
 0x53d   :  { %971 = vsyncadd [#allocation4], 4294967168 }
 0x53e   :  { %647 = vsyncpa [#allocation3], 1 }
 0x53f   :  { %648 = vsyncpa [#allocation6], 1 }
 0x540   :  { %649 = vsyncpa [#allocation4], 1 }

</bundles_post_ra>
